<compile_context>
chip_gen: v7x
topology: tpu7x:2x2x1
jax: 0.10.0
libtpu: 0.0.40
codegen_flags: <defaults>
</compile_context>

<pallas_src>
import functools

import jax
import jax.numpy as jnp
from jax.experimental import pallas as pl
from jax.experimental.pallas import tpu as pltpu


# ----------------------------- kernel ---------------------------------------

def _mish(x):
    # mish(x) = x * tanh(softplus(x)) = x * n / (n + 2),  n = e^x (e^x + 2).
    # Clamp the exp argument: for x > 20, mish(x) == x to f32 precision.
    t = jnp.exp(jnp.minimum(x, 20.0))
    n = t * (t + 2.0)
    return x * n * pl.reciprocal(n + 2.0, approx=True)


def transition_kernel(x_ref, w_ref, b_ref, mask_ref, o_ref, *, H, W):
    """One block of `nb` whole images per grid step, spatial on lanes.

    x_ref    : (nb, C, H*W)  input images (channels on sublanes, pixels on lanes)
    w_ref    : (2C, 9C)      fused weights (bf16): rows [0,C) = 1x1 branch
                             embedded at the centre tap, rows [C,2C) = 3x3
                             branch; BN folded.
    b_ref    : (2C, 1)       folded BN biases (f32)
    mask_ref : (9, 1, H*W)   precomputed 0/1 border masks per tap (f32)
    o_ref    : (nb, C, H*W)  output (lane-dense: last dim = H*W)
    """
    nb, C, HW = x_ref.shape
    mm_dtype = w_ref.dtype

    x = x_ref[...]                                    # (nb, C, HW) f32
    masks = mask_ref[...]                             # (9, 1, HW)  f32 {0,1}

    # im2col: nine lane rotations of the whole block.  Each image's plane is a
    # separate (C, HW) slab, so the rotation never mixes images; the border
    # masks replace the 3x3 zero padding (and fix the within-image wrap).
    # Rolls + masking stay f32 (v5e-safe); cast per tap so the stacked im2col
    # is half-width in VMEM.
    taps = []
    for dh in range(3):
        for dw in range(3):
            t_idx = dh * 3 + dw
            s = (dh - 1) * W + (dw - 1)               # tap offset in flat HW
            # want tap[..., p] = x[..., p + s]  ==  roll(x, -s)
            tap = x if s == 0 else pltpu.roll(x, (-s) % HW, 2)
            if t_idx != 4:                            # centre tap needs no mask
                tap = tap * masks[t_idx]              # (1, HW) broadcast
            taps.append(tap.astype(mm_dtype))
    xcol = jnp.concatenate(taps, axis=1)              # (nb, 9C, HW)

    # Both conv branches in one batched MXU matmul:
    #   (nb, 2C, 9C) @ (nb, 9C, HW) -> (nb, 2C, HW), f32 accumulation.
    w = jnp.broadcast_to(w_ref[...], (nb,) + w_ref.shape)
    y = jax.lax.dot_general(
        w, xcol,
        dimension_numbers=(((2,), (1,)), ((0,), (0,))),
        preferred_element_type=jnp.float32)
    y = y + b_ref[...][None]                          # (1, 2C, 1) bias

    m = _mish(y)
    o_ref[...] = (m[:, :C, :] + m[:, C:, :]).astype(o_ref.dtype)


# ----------------------------- wrapper ---------------------------------------

def _choose_nb(B, C, HW):
    """Images per grid step.

    As many images as fit a conservative (v7x-sized) VMEM budget, while
    keeping >= 2 grid steps whenever B >= 2 (so both v7x TensorCores get
    work) and dividing B exactly so every block holds only whole images
    (required for the lane-rotate + border-mask scheme).
    """
    bytes_in_out = 2 * 2 * C * HW * 4        # double-buffered f32 in + out
    bytes_im2col = 2 * 9 * C * HW * 4        # taps + stacked im2col (f32 bound)
    bytes_temps = 3 * 2 * C * HW * 4         # y / mish temporaries (f32)
    per_img = bytes_in_out + bytes_im2col + bytes_temps
    budget = 20 * 1024 * 1024                # < 32 MiB scoped VMEM, with margin
    cap = max(1, budget // per_img)
    target = min(cap, max(1, (B + 1) // 2))  # >= 2 grid steps when B >= 2
    nb = 1
    for d in range(1, min(target, B) + 1):
        if B % d == 0:
            nb = d
    return nb


def transition_region(x_nchw, w_all, b_all, masks):
    """x_nchw: (B, C, H, W) float32. Returns (B, C, H, W)."""
    B, C, H, W = x_nchw.shape
    HW = H * W
    x_flat = x_nchw.reshape(B, C, HW)        # free reshape: no pad, no transpose
    nb = _choose_nb(B, C, HW)

    out_flat = pl.pallas_call(
        functools.partial(transition_kernel, H=H, W=W),
        out_shape=jax.ShapeDtypeStruct((B, C, HW), x_nchw.dtype),
        grid=(B // nb,),
        in_specs=[
            pl.BlockSpec((nb, C, HW), lambda i: (i, 0, 0)),
            pl.BlockSpec((2 * C, 9 * C), lambda i: (0, 0)),
            pl.BlockSpec((2 * C, 1), lambda i: (0, 0)),
            pl.BlockSpec((9, 1, HW), lambda i: (0, 0, 0)),
        ],
        out_specs=pl.BlockSpec((nb, C, HW), lambda i: (i, 0, 0)),
        compiler_params=pltpu.CompilerParams(
            dimension_semantics=("parallel",),
            vmem_limit_bytes=32 * 1024 * 1024),
    )(x_flat, w_all, b_all, masks)

    return out_flat.reshape(B, C, H, W)


# ------------------------- param setup / folding -----------------------------

def fold_bn(conv_w, gamma, beta, mean, var, eps=1e-5):
    """Fold eval-mode BN into a bias-free conv. conv_w: (O, I, kh, kw)."""
    scale = gamma / jnp.sqrt(var + eps)
    w = conv_w * scale[:, None, None, None]
    b = beta - mean * scale
    return w, b


def pack_weights(p1, p2, dtype=jnp.bfloat16):
    """Fold BN into both branches and pack into one (2C, 9C) fused matrix.

    `dtype` is the MXU operand dtype (bf16 per the perf review; pass
    jnp.float32 for a bit-tighter accuracy).  The bias stays f32.
    """
    w1f, b1f = fold_bn(*p1)                  # (C, C, 1, 1), (C,)
    w2f, b2f = fold_bn(*p2)                  # (C, C, 3, 3), (C,)
    C = w1f.shape[0]
    # 3x3 branch: K index = (kh*3 + kw)*C + c_in  (tap-major, channel-minor).
    w2_mat = jnp.transpose(w2f, (0, 2, 3, 1)).reshape(C, 9 * C)
    # 1x1 branch lives at the centre tap (kh = kw = 1 -> tap 4).
    w1_mat = jnp.zeros((C, 9 * C), jnp.float32).at[:, 4 * C:5 * C].set(
        w1f[:, :, 0, 0])
    w_all = jnp.concatenate([w1_mat, w2_mat], axis=0)      # (2C, 9C)
    b_all = jnp.concatenate([b1f, b2f]).reshape(2 * C, 1)  # (2C, 1)
    return w_all.astype(dtype), b_all.astype(jnp.float32)


def make_border_masks(H, W, dtype=jnp.float32):
    """(9, 1, H*W) 0/1 masks replacing the 3x3 zero padding, per tap."""
    hw = jnp.arange(H * W)
    h = hw // W
    w = hw % W
    masks = []
    for dh in range(3):
        for dw in range(3):
            m = jnp.ones((H * W,), jnp.bool_)
            if dh == 0:
                m = m & (h >= 1)
            elif dh == 2:
                m = m & (h <= H - 2)
            if dw == 0:
                m = m & (w >= 1)
            elif dw == 2:
                m = m & (w <= W - 2)
            masks.append(m)
    return jnp.stack(masks).astype(dtype).reshape(9, 1, H * W)


def make_params(key, C):
    ks = jax.random.split(key, 10)
    # conv weights (PyTorch layout: out, in, kh, kw)
    w1 = jax.random.normal(ks[0], (C, C, 1, 1), jnp.float32) * 0.3
    w2 = jax.random.normal(ks[1], (C, C, 3, 3), jnp.float32) * 0.15
    # BN params / running stats (deterministic, non-trivial)
    g1 = 1.0 + 0.1 * jax.random.normal(ks[2], (C,), jnp.float32)
    b1 = 0.1 * jax.random.normal(ks[3], (C,), jnp.float32)
    m1 = 0.05 * jax.random.normal(ks[4], (C,), jnp.float32)
    v1 = 1.0 + 0.1 * jax.nn.softplus(jax.random.normal(ks[5], (C,), jnp.float32))
    g2 = 1.0 + 0.1 * jax.random.normal(ks[6], (C,), jnp.float32)
    b2 = 0.1 * jax.random.normal(ks[7], (C,), jnp.float32)
    m2 = 0.05 * jax.random.normal(ks[8], (C,), jnp.float32)
    v2 = 1.0 + 0.1 * jax.nn.softplus(jax.random.normal(ks[9], (C,), jnp.float32))
    return (w1, g1, b1, m1, v1), (w2, g2, b2, m2, v2)


# ------------------------------ reference ------------------------------------

def reference(x_nchw, p1, p2):
    """Pure-JAX f32 NCHW reference matching the PyTorch forward (BN in eval)."""
    def branch(x, w, gamma, beta, mean, var, pad):
        y = jax.lax.conv_general_dilated(
            x, w, window_strides=(1, 1), padding=[(pad, pad), (pad, pad)],
            dimension_numbers=("NCHW", "OIHW", "NCHW"))
        scale = gamma / jnp.sqrt(var + 1e-5)
        y = (y - mean[None, :, None, None]) * scale[None, :, None, None] \
            + beta[None, :, None, None]
        return y * jnp.tanh(jax.nn.softplus(y))

    y1 = branch(x_nchw, *p1, pad=0)
    y2 = branch(x_nchw, *p2, pad=1)
    return y1 + y2


# --------------------------------- main ---------------------------------------

if __name__ == "__main__":
    B, C, H, W = 2, 4, 16, 16
    key = jax.random.PRNGKey(0)
    kx, kp = jax.random.split(key)

    x = jax.random.normal(kx, (B, C, H, W), jnp.float32)
    p1, p2 = make_params(kp, C)
    w_all, b_all = pack_weights(p1, p2, dtype=jnp.bfloat16)
    masks = make_border_masks(H, W)

    out = jax.block_until_ready(transition_region(x, w_all, b_all, masks))
    ref = jax.block_until_ready(reference(x, p1, p2))

    assert out.shape == (B, C, H, W)
    # bf16 MXU operands (per perf review) plus the approximate EUP reciprocal
    # in mish leave ~1e-2-scale worst-case quantization error vs. the pure-f32
    # reference, so the check uses 2e-2; this still catches any structural bug
    # (a wrong tap / mask / weight gives O(0.1-1) errors).  With
    # pack_weights(..., dtype=jnp.float32) the kernel meets atol=rtol=1e-2.
    max_err = float(jnp.max(jnp.abs(out - ref)))
    assert jnp.allclose(out, ref, atol=2e-2, rtol=2e-2), max_err

    print("KERNEL_OK")
</pallas_src>

<mosaic_0001>
module attributes {stable_mosaic.version = 11 : i64} {
  func.func @transition_kernel(%arg0: i32, %arg1: memref<1x4x256xf32, #tpu.memory_space<vmem>>, %arg2: memref<8x36xbf16, #tpu.memory_space<vmem>>, %arg3: memref<8x1xf32, #tpu.memory_space<vmem>>, %arg4: memref<9x1x256xf32, #tpu.memory_space<vmem>>, %arg5: memref<1x4x256xf32, #tpu.memory_space<vmem>>) attributes {dimension_semantics = [#tpu.dimension_semantics<parallel>], iteration_bounds = array<i64: 2>, scalar_prefetch = 0 : i64, scratch_operands = 0 : i64, tpu.core_type = #tpu.core_type<tc>, window_params = [{transform_indices = @transform_0, window_bounds = array<i64: 1, 4, 256>}, {pipeline_mode = #tpu.pipeline_mode<synchronous>, transform_indices = @transform_1, window_bounds = array<i64: 8, 36>}, {pipeline_mode = #tpu.pipeline_mode<synchronous>, transform_indices = @transform_2, window_bounds = array<i64: 8, 1>}, {pipeline_mode = #tpu.pipeline_mode<synchronous>, transform_indices = @transform_3, window_bounds = array<i64: 9, 1, 256>}, {transform_indices = @transform_4, window_bounds = array<i64: 1, 4, 256>}]} {
    %c0 = arith.constant 0 : index
    %c0_0 = arith.constant 0 : index
    %c0_1 = arith.constant 0 : index
    %0 = vector.load %arg1[%c0, %c0_0, %c0_1] : memref<1x4x256xf32, #tpu.memory_space<vmem>>, vector<1x4x256xf32>
    %c0_2 = arith.constant 0 : index
    %c0_3 = arith.constant 0 : index
    %c0_4 = arith.constant 0 : index
    %1 = vector.load %arg4[%c0_2, %c0_3, %c0_4] : memref<9x1x256xf32, #tpu.memory_space<vmem>>, vector<9x1x256xf32>
    %c17_i32 = arith.constant 17 : i32
    %2 = tpu.dynamic_rotate %0 by %c17_i32 dim 2 : vector<1x4x256xf32>, i32 -> vector<1x4x256xf32>
    %3 = vector.extract_strided_slice %1 {offsets = [0, 0, 0], sizes = [1, 1, 256], strides = [1, 1, 1]} : vector<9x1x256xf32> to vector<1x1x256xf32>
    %4 = vector.shape_cast %3 : vector<1x1x256xf32> to vector<1x256xf32>
    %5 = vector.shape_cast %4 : vector<1x256xf32> to vector<1x1x256xf32>
    %6 = vector.broadcast %5 : vector<1x1x256xf32> to vector<1x4x256xf32>
    %7 = arith.mulf %2, %6 : vector<1x4x256xf32>
    %8 = arith.truncf %7 : vector<1x4x256xf32> to vector<1x4x256xbf16>
    %c16_i32 = arith.constant 16 : i32
    %9 = tpu.dynamic_rotate %0 by %c16_i32 dim 2 : vector<1x4x256xf32>, i32 -> vector<1x4x256xf32>
    %10 = vector.extract_strided_slice %1 {offsets = [1, 0, 0], sizes = [1, 1, 256], strides = [1, 1, 1]} : vector<9x1x256xf32> to vector<1x1x256xf32>
    %11 = vector.shape_cast %10 : vector<1x1x256xf32> to vector<1x256xf32>
    %12 = vector.shape_cast %11 : vector<1x256xf32> to vector<1x1x256xf32>
    %13 = vector.broadcast %12 : vector<1x1x256xf32> to vector<1x4x256xf32>
    %14 = arith.mulf %9, %13 : vector<1x4x256xf32>
    %15 = arith.truncf %14 : vector<1x4x256xf32> to vector<1x4x256xbf16>
    %c15_i32 = arith.constant 15 : i32
    %16 = tpu.dynamic_rotate %0 by %c15_i32 dim 2 : vector<1x4x256xf32>, i32 -> vector<1x4x256xf32>
    %17 = vector.extract_strided_slice %1 {offsets = [2, 0, 0], sizes = [1, 1, 256], strides = [1, 1, 1]} : vector<9x1x256xf32> to vector<1x1x256xf32>
    %18 = vector.shape_cast %17 : vector<1x1x256xf32> to vector<1x256xf32>
    %19 = vector.shape_cast %18 : vector<1x256xf32> to vector<1x1x256xf32>
    %20 = vector.broadcast %19 : vector<1x1x256xf32> to vector<1x4x256xf32>
    %21 = arith.mulf %16, %20 : vector<1x4x256xf32>
    %22 = arith.truncf %21 : vector<1x4x256xf32> to vector<1x4x256xbf16>
    %c1_i32 = arith.constant 1 : i32
    %23 = tpu.dynamic_rotate %0 by %c1_i32 dim 2 : vector<1x4x256xf32>, i32 -> vector<1x4x256xf32>
    %24 = vector.extract_strided_slice %1 {offsets = [3, 0, 0], sizes = [1, 1, 256], strides = [1, 1, 1]} : vector<9x1x256xf32> to vector<1x1x256xf32>
    %25 = vector.shape_cast %24 : vector<1x1x256xf32> to vector<1x256xf32>
    %26 = vector.shape_cast %25 : vector<1x256xf32> to vector<1x1x256xf32>
    %27 = vector.broadcast %26 : vector<1x1x256xf32> to vector<1x4x256xf32>
    %28 = arith.mulf %23, %27 : vector<1x4x256xf32>
    %29 = arith.truncf %28 : vector<1x4x256xf32> to vector<1x4x256xbf16>
    %30 = arith.truncf %0 : vector<1x4x256xf32> to vector<1x4x256xbf16>
    %c255_i32 = arith.constant 255 : i32
    %31 = tpu.dynamic_rotate %0 by %c255_i32 dim 2 : vector<1x4x256xf32>, i32 -> vector<1x4x256xf32>
    %32 = vector.extract_strided_slice %1 {offsets = [5, 0, 0], sizes = [1, 1, 256], strides = [1, 1, 1]} : vector<9x1x256xf32> to vector<1x1x256xf32>
    %33 = vector.shape_cast %32 : vector<1x1x256xf32> to vector<1x256xf32>
    %34 = vector.shape_cast %33 : vector<1x256xf32> to vector<1x1x256xf32>
    %35 = vector.broadcast %34 : vector<1x1x256xf32> to vector<1x4x256xf32>
    %36 = arith.mulf %31, %35 : vector<1x4x256xf32>
    %37 = arith.truncf %36 : vector<1x4x256xf32> to vector<1x4x256xbf16>
    %c241_i32 = arith.constant 241 : i32
    %38 = tpu.dynamic_rotate %0 by %c241_i32 dim 2 : vector<1x4x256xf32>, i32 -> vector<1x4x256xf32>
    %39 = vector.extract_strided_slice %1 {offsets = [6, 0, 0], sizes = [1, 1, 256], strides = [1, 1, 1]} : vector<9x1x256xf32> to vector<1x1x256xf32>
    %40 = vector.shape_cast %39 : vector<1x1x256xf32> to vector<1x256xf32>
    %41 = vector.shape_cast %40 : vector<1x256xf32> to vector<1x1x256xf32>
    %42 = vector.broadcast %41 : vector<1x1x256xf32> to vector<1x4x256xf32>
    %43 = arith.mulf %38, %42 : vector<1x4x256xf32>
    %44 = arith.truncf %43 : vector<1x4x256xf32> to vector<1x4x256xbf16>
    %c240_i32 = arith.constant 240 : i32
    %45 = tpu.dynamic_rotate %0 by %c240_i32 dim 2 : vector<1x4x256xf32>, i32 -> vector<1x4x256xf32>
    %46 = vector.extract_strided_slice %1 {offsets = [7, 0, 0], sizes = [1, 1, 256], strides = [1, 1, 1]} : vector<9x1x256xf32> to vector<1x1x256xf32>
    %47 = vector.shape_cast %46 : vector<1x1x256xf32> to vector<1x256xf32>
    %48 = vector.shape_cast %47 : vector<1x256xf32> to vector<1x1x256xf32>
    %49 = vector.broadcast %48 : vector<1x1x256xf32> to vector<1x4x256xf32>
    %50 = arith.mulf %45, %49 : vector<1x4x256xf32>
    %51 = arith.truncf %50 : vector<1x4x256xf32> to vector<1x4x256xbf16>
    %c239_i32 = arith.constant 239 : i32
    %52 = tpu.dynamic_rotate %0 by %c239_i32 dim 2 : vector<1x4x256xf32>, i32 -> vector<1x4x256xf32>
    %53 = vector.extract_strided_slice %1 {offsets = [8, 0, 0], sizes = [1, 1, 256], strides = [1, 1, 1]} : vector<9x1x256xf32> to vector<1x1x256xf32>
    %54 = vector.shape_cast %53 : vector<1x1x256xf32> to vector<1x256xf32>
    %55 = vector.shape_cast %54 : vector<1x256xf32> to vector<1x1x256xf32>
    %56 = vector.broadcast %55 : vector<1x1x256xf32> to vector<1x4x256xf32>
    %57 = arith.mulf %52, %56 : vector<1x4x256xf32>
    %58 = arith.truncf %57 : vector<1x4x256xf32> to vector<1x4x256xbf16>
    %59 = tpu.concatenate %8, %15, %22, %29, %30, %37, %44, %51, %58 in 1 : vector<1x4x256xbf16>, vector<1x4x256xbf16>, vector<1x4x256xbf16>, vector<1x4x256xbf16>, vector<1x4x256xbf16>, vector<1x4x256xbf16>, vector<1x4x256xbf16>, vector<1x4x256xbf16>, vector<1x4x256xbf16> -> vector<1x36x256xbf16>
    %c0_5 = arith.constant 0 : index
    %c0_6 = arith.constant 0 : index
    %60 = vector.load %arg2[%c0_5, %c0_6] : memref<8x36xbf16, #tpu.memory_space<vmem>>, vector<8x36xbf16>
    %61 = vector.shape_cast %60 : vector<8x36xbf16> to vector<1x8x36xbf16>
    %cst = arith.constant dense<0.000000e+00> : vector<1x8x256xf32>
    %62 = tpu.matmul %61, %59, %cst {dimension_numbers = #tpu.dot_dimension_numbers<[2], [1], [1], [2], [0, 0, 0, 1, 1, 2], [0], [0]>} : vector<1x8x36xbf16>, vector<1x36x256xbf16>, vector<1x8x256xf32> -> vector<1x8x256xf32>
    %c0_7 = arith.constant 0 : index
    %c0_8 = arith.constant 0 : index
    %63 = vector.load %arg3[%c0_7, %c0_8] : memref<8x1xf32, #tpu.memory_space<vmem>>, vector<8x1xf32>
    %64 = vector.shape_cast %63 : vector<8x1xf32> to vector<1x8x1xf32>
    %65 = vector.broadcast %64 : vector<1x8x1xf32> to vector<1x8x256xf32>
    %66 = arith.addf %62, %65 : vector<1x8x256xf32>
    %cst_9 = arith.constant 2.000000e+01 : f32
    %67 = vector.broadcast %cst_9 : f32 to vector<1x8x256xf32>
    %68 = arith.minimumf %66, %67 : vector<1x8x256xf32>
    %69 = math.exp %68 : vector<1x8x256xf32>
    %cst_10 = arith.constant 2.000000e+00 : f32
    %70 = vector.broadcast %cst_10 : f32 to vector<1x8x256xf32>
    %71 = arith.addf %69, %70 : vector<1x8x256xf32>
    %72 = arith.mulf %69, %71 : vector<1x8x256xf32>
    %73 = arith.mulf %66, %72 : vector<1x8x256xf32>
    %cst_11 = arith.constant 2.000000e+00 : f32
    %74 = vector.broadcast %cst_11 : f32 to vector<1x8x256xf32>
    %75 = arith.addf %72, %74 : vector<1x8x256xf32>
    %76 = tpu.reciprocal %75 {approx = true} : vector<1x8x256xf32> -> vector<1x8x256xf32>
    %77 = arith.mulf %73, %76 : vector<1x8x256xf32>
    %78 = vector.extract_strided_slice %77 {offsets = [0, 0, 0], sizes = [1, 4, 256], strides = [1, 1, 1]} : vector<1x8x256xf32> to vector<1x4x256xf32>
    %79 = vector.extract_strided_slice %77 {offsets = [0, 4, 0], sizes = [1, 4, 256], strides = [1, 1, 1]} : vector<1x8x256xf32> to vector<1x4x256xf32>
    %80 = arith.addf %78, %79 : vector<1x4x256xf32>
    %c0_12 = arith.constant 0 : index
    %c0_13 = arith.constant 0 : index
    %c0_14 = arith.constant 0 : index
    %81 = vector.load %arg5[%c0_12, %c0_13, %c0_14] : memref<1x4x256xf32, #tpu.memory_space<vmem>>, vector<1x4x256xf32>
    tpu.vector_store %arg5[%c0_12, %c0_13, %c0_14], %80 {strides = array<i32>} : memref<1x4x256xf32, #tpu.memory_space<vmem>>, vector<1x4x256xf32>,
    return
  }
  func.func @transform_0(%arg0: i32) -> (i32, i32, i32) {
    %c0_i32 = arith.constant 0 : i32
    %c0_i32_0 = arith.constant 0 : i32
    %c0_i32_1 = arith.constant 0 : i32
    return %arg0, %c0_i32, %c0_i32_0 : i32, i32, i32
  }
  func.func @transform_1(%arg0: i32) -> (i32, i32) {
    %c0_i32 = arith.constant 0 : i32
    %c0_i32_0 = arith.constant 0 : i32
    %c0_i32_1 = arith.constant 0 : i32
    return %c0_i32, %c0_i32_0 : i32, i32
  }
  func.func @transform_2(%arg0: i32) -> (i32, i32) {
    %c0_i32 = arith.constant 0 : i32
    %c0_i32_0 = arith.constant 0 : i32
    %c0_i32_1 = arith.constant 0 : i32
    return %c0_i32, %c0_i32_0 : i32, i32
  }
  func.func @transform_3(%arg0: i32) -> (i32, i32, i32) {
    %c0_i32 = arith.constant 0 : i32
    %c0_i32_0 = arith.constant 0 : i32
    %c0_i32_1 = arith.constant 0 : i32
    %c0_i32_2 = arith.constant 0 : i32
    return %c0_i32, %c0_i32_0, %c0_i32_1 : i32, i32, i32
  }
  func.func @transform_4(%arg0: i32) -> (i32, i32, i32) {
    %c0_i32 = arith.constant 0 : i32
    %c0_i32_0 = arith.constant 0 : i32
    %c0_i32_1 = arith.constant 0 : i32
    return %arg0, %c0_i32, %c0_i32_0 : i32, i32, i32
  }
}

</mosaic_0001>

<bundles_post_ra>
// kernel: tpu_custom_call.1
= control target key start
LH: loop header
LB: loop body
LE: loop exit
PB: predicated region body
PF: predicated region fallthrough
CT: control target
= control target key end

     0   :  { %9 = vsyncpa [#allocation3], 0  ;;  %s1256_s0 = inlined_call_operand.hbm [shape: f32[2,4,256], index: 0, kind: input, shape index: {}]   ;;  %s1257_s1 = inlined_call_operand.hbm [shape: bf16[8,36], index: 1, kind: input, shape index: {}]   ;;  %s1258_s2 = inlined_call_operand.vmem [shape: f32[8,1], index: 2, kind: input, shape index: {}]   ;;  %s1259_s3 = inlined_call_operand.vmem [shape: f32[9,1,256], index: 3, kind: input, shape index: {}]   ;;  %s1260_s4 = inlined_call_operand.hbm [shape: f32[2,4,256], index: 4, kind: output, shape index: {}]  }
   0x1   :  { %11 = vsyncpa [#allocation3 + $0x1], 0 }
   0x2   :  { %12 = vsyncpa [#allocation6], 0 }
   0x3   :  { %13 = vsyncpa [#allocation4], 0 }
   0x4   :  { %15 = vsyncpa [#allocation4 + $0x1], 0  ;;  %s926_s15 = smov 0   ;;  %s928_s16 = smov 0  }
   0x5   :  { %s930_s17 = smov 0   ;;  %s932_s18 = smov 0  }
   0x6 LB: > { %s947_s19 = sadd.s32 4294967295, %s887_s18   ;;  %s663_s20 = sadd.s32 4294967294, %s887_s18   ;;  %s887_s18 = sphi %s932_s18, %s1284_s18   ;;  %s883_s17 = sphi %s930_s17, %s1283_s17   ;;  %s879_s16 = sphi %s928_s16, %s1282_s16   ;;  %s875_s15 = sphi %s926_s15, %s1281_s15  }
   0x7   : > { %p41_p0 = scmp.ne.s32.totalorder %s879_s16, %s875_s15  ;;  %p1261_p1 = scmp.eq.s32.totalorder %s947_s19, 0 }
   0x8   : > { %p134_p3 = scmp.eq.s32.totalorder %s663_s20, 1  ;;  %p664_p5 = scmp.ge.s32.totalorder %s887_s18, 1 }
   0x9   : > { %p956_p4 = por %p1261_p1, %p41_p0  ;;  %p141_p7 = scmp.lt.s32.totalorder %s887_s18, 3 }
   0xa   : > { %p961_p6 = por %p134_p3, %p41_p0  ;;  %s889_s24 = smov [#allocation5]  }
   0xb   : > { %s1264_s21 = scalar_select %p956_p4, 1, 0 }
   0xc   : > { %s1265_s22 = scalar_select %p961_p6, 1, 0 }
   0xd   : > { %p966_p8 = pnand %p664_p5, %p141_p7  ;;  %s154_s25 = sshll.u32 %s889_s24, 4  ;;  %s155_s25 = int_to_ptr.vmem [resolvable:$true] %s154_s25 }
   0xe   : > { %s974_s26 = sadd.s32 1, %s887_s18   ;;  %s28_s30 = sadd.s32 1, %s883_s17 }
   0xf   : > { %s1266_s23 = scalar_select %p966_p8, 1, 0 }
  0x10   : > { %p691_p10 = pneg %p966_p8  ;;  %s25_s28 = ssub.s32 %s887_s18, %s974_s26 }
  0x11   : > { %p984_p12 = scmp.eq.s32.totalorder %s25_s28, 0  ;;  %s759_s7 = scalar_lea.hbm %s1257_s1, 64 }
  0x12   : > { %p978_p11 = pnand %p691_p10, %p1261_p1  ;;  %p760_p0 = scmp.ne.s32.totalorder %s1257_s1, %s759_s7 }
  0x13   : > { %s1268_s29 = scalar_select %p984_p12, 1, 0 }
  0x14   : > { %p761_p3 = pneg %p978_p11  ;;  %p766_p10 = scmp.lt.u32.totalorder %s759_s7, %s1257_s1 }
  0x16   : > { %p762_p5 = pnand %p761_p3, %p760_p0 }
  0x18   : > { %p763_p7 = pneg %p762_p5 }
  0x1a   : > { %p768_p9 = pnand %p766_p10, %p763_p7 }
  0x1c   : > { %771 = shalt.err (!%p768_p9)
}
  0x1d   : > { %s772_s12 = scalar_lea.vmem %s155_s25, 64  ;;  %p780_p6 = scmp.lt.s32.totalorder %s155_s25, %s155_s25 }
  0x1e   : > { %p773_p1 = scmp.ne.s32.totalorder %s155_s25, %s772_s12  ;;  %p781_p4 = scmp.lt.s32.totalorder %s772_s12, %s772_s12 }
  0x20   : > { %p775_p2 = pnand %p773_p1, %p761_p3  ;;  %p782_p8 = por %p781_p4, %p780_p6 }
  0x22   : > { %p776_p13 = pneg %p775_p2 }
  0x24   : > { %p783_p12 = pnand %p782_p8, %p776_p13 }
  0x26   : > { %786 = shalt.err (!%p783_p12)
}
  0x27   : > { %694 = dma.hbm_to_vmem [thread:$0]  (!%p978_p11), %s1257_s1, 64, %s155_s25, [#allocation6]  }
  0x28   : > { %p1269_p1 = scmp.ne.s32.totalorder %s1268_s29, 0  ;;  %p36_p2 = scmp.eq.s32.totalorder %s887_s18, 0 }
  0x29   : > { %p1270_p4 = scmp.ne.s32.totalorder %s883_s17, %s879_s16  ;;  %p1271_p6 = scmp.eq.s32.totalorder %s947_s19, 1 }
  0x2a   : > { %s1010_s20 = scalar_select %p1269_p1, %s883_s17, %s28_s30  }
  0x2b   : > { %p1018_p8 = por %p1271_p6, %p1270_p4  ;;  %p704_p9 = scmp.lt.s32.totalorder %s887_s18, 2 }
  0x2c   : > { %s171_s27 = sand.u32 1, %s883_s17   ;;  %p1273_p12 = pmov %p1270_p4 }
  0x2d   : > { %s667_s28 = sshll.u32 %s171_s27, 3  ;;  %s681_s5 = sshll.u32 %s887_s18, 7 }
  0x2e   : > { %p37_p13 = por %p36_p2, %p1273_p12  ;;  %s1031_s25 = scalar_lea.hbm %s1256_s0, %s681_s5 }
  0x2f   : > { %s175_s29 = scalar_lea.vmem [#allocation2], %s667_s28  ;;  %s172_s9 = scalar_lea.sflag [#allocation3], %s171_s27 }
  0x30   : > { %s183_s30 = sshll.u32 %s175_s29, 4  ;;  %p1033_p11 = pnand %p704_p9, %p37_p13  ;;  %s1037_s30 = int_to_ptr.vmem [resolvable:$true] %s183_s30 }
  0x31   : > { %s787_s10 = scalar_lea.hbm %s1031_s25, 128  ;;  %s792_s13 = scalar_lea.hbm %s1256_s0, 256 }
  0x32   : > { %p788_p0 = scmp.ne.s32.totalorder %s1031_s25, %s787_s10  ;;  %p789_p3 = pneg %p1033_p11 }
  0x33   : > { %p793_p10 = scmp.lt.u32.totalorder %s1031_s25, %s1256_s0  ;;  %p794_p1 = scmp.lt.u32.totalorder %s792_s13, %s787_s10 }
  0x34   : > { %p790_p5 = pnand %p789_p3, %p788_p0  ;;  %p796_p4 = scmp.lt.u32.totalorder %s787_s10, %s1031_s25 }
  0x35   : > { %p795_p2 = por %p794_p1, %p793_p10 }
  0x36   : > { %p791_p7 = pneg %p790_p5 }
  0x37   : > { %p797_p6 = por %p796_p4, %p795_p2 }
  0x39   : > { %p798_p9 = pnand %p797_p6, %p791_p7 }
  0x3b   : > { %801 = shalt.err (!%p798_p9)
}
  0x3c   : > { %s802_s27 = scalar_lea.vmem %s1037_s30, 128  ;;  %s890_s5 = smov [#allocation2]  }
  0x3d   : > { %p803_p12 = scmp.ne.s32.totalorder %s1037_s30, %s802_s27  ;;  %s807_s6 = sshll.u32 %s890_s5, 4  ;;  %s808_s6 = int_to_ptr.vmem [resolvable:$false] %s807_s6 }
  0x3e   : > { %s809_s7 = scalar_lea.vmem %s808_s6, 256  ;;  %p810_p5 = scmp.lt.s32.totalorder %s1037_s30, %s808_s6 }
  0x3f   : > { %p805_p13 = pnand %p803_p12, %p789_p3  ;;  %p811_p10 = scmp.lt.s32.totalorder %s809_s7, %s802_s27 }
  0x41   : > { %p806_p0 = pneg %p805_p13  ;;  %p812_p1 = por %p811_p10, %p810_p5 }
  0x43   : > { %p813_p2 = pnand %p812_p1, %p806_p0 }
  0x45   : > { %816 = shalt.err (!%p813_p2)
}
  0x46   : > { %698 = dma.hbm_to_vmem [thread:$0]  (!%p1033_p11), %s1031_s25, 128, %s1037_s30, %s172_s9  }
  0x47   : > { %p1275_p7 = scmp.ne.s32.totalorder %s1266_s23, 0 }
  0x48   : > { %s1067_s29 = sand.u32 (!%p1275_p7), 1, %s879_s16   ;;  %p1276_p3 = scmp.ne.s32.totalorder (!%p1275_p7), %s1264_s21, 0 }
  0x49   : > { %192 = sbr.rel (%p1275_p7) target bundleno = 509 (0x1fd), region = 36  ;;  %s671_s10 = sshll.u32 (!%p1275_p7), %s1067_s29, 3 }
  0x4a   : > { %s195_s11 = scalar_lea.sflag (!%p1275_p7), [#allocation3], %s1067_s29  ;;  %s198_s12 = scalar_lea.vmem (!%p1275_p7), [#allocation2], %s671_s10 }
  0x50   : > { %862 = dma.done.wait (%p1276_p3), %s195_s11, 128  }
  0x51   : > { %864 = vsyncadd (%p1276_p3), %s195_s11, 4294967168  ;;  %p1277_p11 = scmp.eq.s32.totalorder %s947_s19, 0 }
  0x53   : > { %866 = dma.done.wait (%p1277_p11), [#allocation6], 64   ;;  %p1278_p4 = pmov %p1277_p11 }
  0x54   : > { %v1081_v0 = vld [vmem:[%s198_s12] sm:$0xff]  ;;  %s891_s23 = smov 15   ;;  %s892_s25 = smov 16   ;;  %v898_v2 = vmov 0   ;;  %v244_v4 = vlaneseq  ;;  %vm444_vm4 = vcmask 1041408   ;;  %vm451_vm6 = vcmask 1043456  }
  0x55   : > { %868 = vsyncadd (%p1278_p4), [#allocation6], 4294967232  ;;  %286 = vrot.lane.b32.xlu1 %v1081_v0, %s891_s23  ;;  %264 = vrot.lane.b32.xlu0 %v1081_v0, %s892_s25  ;;  %v1087_v1 = vcombine.high %v1081_v0, %v1081_v0  ;;  %s893_s21 = smov 17   ;;  %s894_s30 = smov 1   ;;  %v480_v3 = vld [vmem:[%s1258_s2] sm:$0xff]  ;;  %vm456_vm8 = vcmask 1045504  }
  0x56   : > { %s895_s8 = smov 127   ;;  %s896_s9 = smov 113   ;;  %528 = vmatprep.mubr.bf16.mxu0 %v898_v2  ;;  %749 = vset.pattern.permute.xlu0 %v898_v2  ;;  %v251_v5 = vshrl.u32 %v244_v4, 7  ;;  %v1106_v6 = vand.u32 127, %v244_v4  ;;  %v231_v11 = vld [vmem:[%s1259_s3 + $0x4] sm:$0x3] }
  0x57   : > { %s897_s13 = smov 112   ;;  %s899_s14 = smov 111   ;;  %v229_v12 = vld [vmem:[%s1259_s3] sm:$0x3]  ;;  %v230_v17 = vld [vmem:[%s1259_s3 + $0x2] sm:$0x3] }
  0x58   : > { %v1108_v9 = vsub.s32 0, %v251_v5  ;;  %v1110_v10 = vsub.s32 1, %v251_v5  ;;  %vm290_vm0 = vcmp.lt.s32.totalorder %v1106_v6, 15  ;;  %v232_v18 = vld [vmem:[%s1259_s3 + $0x6] sm:$0x3]  ;;  %vm246_vm1 = vcmp.lt.s32.totalorder %v1106_v6, 17 }
  0x59   : > { %240 = vrot.lane.b32.xlu0 %v1081_v0, %s893_s21  ;;  %288 = vrot.lane.b32.xlu1 %v1087_v1, %s891_s23  ;;  %vm268_vm2 = vcmp.lt.s32.totalorder %v1106_v6, 16  ;;  %vm312_vm3 = vcmp.lt.s32.totalorder %v1106_v6, 1  ;;  %v233_v26 = vld [vmem:[%s1259_s3 + $0xa] sm:$0x3]  ;;  %v234_v36 = vld [vmem:[%s1259_s3 + $0xc] sm:$0x3] }
  0x5a   : > { %v297_v14 = vrot.slane %v231_v11, %v1108_v9  ;;  %v301_v15 = vrot.slane %v231_v11, %v1110_v10  ;;  %v253_v21 = vrot.slane %v229_v12, %v1108_v9  ;;  %v257_v22 = vrot.slane %v229_v12, %v1110_v10  ;;  %s682_s6 = sshll.u32 %s947_s19, 7  ;;  %s226_s7 = scalar_lea.vmem [#allocation7], %s671_s10 }
  0x5b   : > { %v275_v23 = vrot.slane %v230_v17, %v1108_v9  ;;  %v279_v24 = vrot.slane %v230_v17, %v1110_v10  ;;  %v319_v25 = vrot.slane %v232_v18, %v1108_v9  ;;  %v323_v31 = vrot.slane %v232_v18, %v1110_v10  ;;  %s583_s11 = sshll.u32 %s226_s7, 4  ;;  %s900_s19 = smov [#allocation7]   ;;  %s1214_s11 = int_to_ptr.vmem [resolvable:$true] %s583_s11 }
  0x5c   : > { %vm336_vm5 = vcmp.lt.s32.totalorder %v1106_v6, 127  ;;  %v343_v37 = vrot.slane %v233_v26, %v1108_v9  ;;  %v347_v38 = vrot.slane %v233_v26, %v1110_v10  ;;  %vm358_vm7 = vcmp.lt.s32.totalorder %v1106_v6, 113  ;;  %s821_s10 = sshll.u32 %s900_s19, 4  ;;  %s822_s10 = int_to_ptr.vmem [resolvable:$false] %s821_s10 }
  0x5d   : > { %242 = vrot.lane.b32.xlu1 %v1087_v1, %s893_s21  ;;  %266 = vrot.lane.b32.xlu0 %v1087_v1, %s892_s25  ;;  %v365_v47 = vrot.slane %v234_v36, %v1108_v9  ;;  %v369_v54 = vrot.slane %v234_v36, %v1110_v10  ;;  %vm380_vm9 = vcmp.lt.s32.totalorder %v1106_v6, 112  ;;  %vm402_vm10 = vcmp.lt.s32.totalorder %v1106_v6, 111  ;;  %s1212_s25 = scalar_lea.hbm %s1260_s4, %s682_s6  ;;  %s569_s21 = scalar_lea.sflag [#allocation4], %s1067_s29 }
  0x5e   : > { %vm486_vm11 = vcmask 293888   ;;  %p824_p13 = scmp.lt.s32.totalorder %s1214_s11, %s822_s10 }
  0x61   : > { %310 = vrot.lane.b32.xlu1 %v1087_v1, %s894_s30  ;;  %308 = vrot.lane.b32.xlu0 %v1081_v0, %s894_s30  ;;  %s817_s30 = scalar_lea.vmem %s1214_s11, 128 }
  0x62   : > { %p818_p6 = scmp.ne.s32.totalorder %s1214_s11, %s817_s30 }
  0x64   : > { %p819_p9 = pnand %p818_p6, %p1018_p8 }
  0x65   : > { %334 = vrot.lane.b32.xlu1 %v1087_v1, %s895_s8  ;;  %332 = vrot.lane.b32.xlu0 %v1081_v0, %s895_s8  ;;  %s823_s8 = scalar_lea.vmem %s822_s10, 256 }
  0x66   : > { %p820_p12 = pneg %p819_p9  ;;  %p825_p0 = scmp.lt.s32.totalorder %s823_s8, %s817_s30 }
  0x68   : > { %p826_p5 = por %p825_p0, %p824_p13 }
  0x69   : > { %356 = vrot.lane.b32.xlu1 %v1087_v1, %s896_s9  ;;  %354 = vrot.lane.b32.xlu0 %v1081_v0, %s896_s9 }
  0x6a   : > { %p827_p10 = pnand %p826_p5, %p820_p12 }
  0x6d   : > { %378 = vrot.lane.b32.xlu1 %v1087_v1, %s897_s13  ;;  %376 = vrot.lane.b32.xlu0 %v1081_v0, %s897_s13 }
  0x71   : > { %400 = vrot.lane.b32.xlu1 %v1087_v1, %s899_s14  ;;  %398 = vrot.lane.b32.xlu0 %v1081_v0, %s899_s14 }
  0x75   : > { %483 = vperm.xlu0 %749, %v480_v3  }
  0xc7   : > { %v287_v7 = vpop.permute.xlu1 %286  ;;  %v265_v8 = vpop.permute.xlu0 %264 }
  0xcb   : > { %v241_v13 = vpop.permute.xlu0 %240  ;;  %v289_v16 = vpop.permute.xlu1 %288 }
  0xcc   : > { %v291_v19 = vsel %vm290_vm0, %v287_v7, %v289_v16  ;;  %v292_v20 = vsel %vm290_vm0, %v289_v16, %v287_v7  ;;  %v235_v16 = vld [vmem:[%s1259_s3 + $0xe] sm:$0x3] }
  0xcd   : > { %v304_v27 = vmul.f32 %v297_v14, %v292_v20  ;;  %v305_v28 = vmul.f32 %v301_v15, %v291_v19 }
  0xcf   : > { %v243_v29 = vpop.permute.xlu1 %242  ;;  %v267_v30 = vpop.permute.xlu0 %266  ;;  %v306_v43 = vpack.c.bf16 %v304_v27, %v304_v27  ;;  %v307_v44 = vpack.c.bf16 %v305_v28, %v305_v28  ;;  %v387_v27 = vrot.slane %v235_v16, %v1108_v9  ;;  %v391_v28 = vrot.slane %v235_v16, %v1110_v10 }
  0xd0   : > { %v247_v32 = vsel %vm246_vm1, %v241_v13, %v243_v29  ;;  %v248_v33 = vsel %vm246_vm1, %v243_v29, %v241_v13  ;;  %v269_v34 = vsel %vm268_vm2, %v265_v8, %v267_v30  ;;  %v270_v35 = vsel %vm268_vm2, %v267_v30, %v265_v8  ;;  %v236_v29 = vld [vmem:[%s1259_s3 + $0x10] sm:$0x3] }
  0xd1   : > { %v260_v39 = vmul.f32 %v253_v21, %v248_v33  ;;  %v261_v40 = vmul.f32 %v257_v22, %v247_v32  ;;  %v282_v41 = vmul.f32 %v275_v23, %v270_v35  ;;  %v283_v42 = vmul.f32 %v279_v24, %v269_v34 }
  0xd2   : > { %v426_v59 = vrot.slane %v306_v43, 4  ;;  %v427_v60 = vrot.slane %v307_v44, 4  ;;  %v331_v30 = vpack.c.bf16 %v1087_v1, %v1087_v1  ;;  %v330_v35 = vpack.c.bf16 %v1081_v0, %v1081_v0 }
  0xd3   : > { %v311_v45 = vpop.permute.xlu1 %310  ;;  %v309_v46 = vpop.permute.xlu0 %308  ;;  %v284_v48 = vpack.c.bf16 %v282_v41, %v282_v41  ;;  %v285_v49 = vpack.c.bf16 %v283_v42, %v283_v42  ;;  %v262_v55 = vpack.c.bf16 %v260_v39, %v260_v39  ;;  %v263_v56 = vpack.c.bf16 %v261_v40, %v261_v40 }
  0xd4   : > { %v313_v50 = vsel %vm312_vm3, %v309_v46, %v311_v45  ;;  %v314_v51 = vsel %vm312_vm3, %v311_v45, %v309_v46  ;;  %v409_v1 = vrot.slane %v236_v29, %v1108_v9  ;;  %v413_v42 = vrot.slane %v236_v29, %v1110_v10 }
  0xd5   : > { %v326_v52 = vmul.f32 %v319_v25, %v314_v51  ;;  %v327_v53 = vmul.f32 %v323_v31, %v313_v50  ;;  %v422_v57 = vrot.slane %v284_v48, 6  ;;  %v423_v58 = vrot.slane %v285_v49, 6 }
  0xd7   : > { %v328_v61 = vpack.c.bf16 %v326_v52, %v326_v52  ;;  %v329_v62 = vpack.c.bf16 %v327_v53, %v327_v53  ;;  %v335_v63 = vpop.permute.xlu1 %334  ;;  %v333_v2 = vpop.permute.xlu0 %332  ;;  %v450_v5 = vsel %vm444_vm4, %v263_v56, %v423_v58  ;;  %v447_v7 = vsel %vm444_vm4, %v262_v55, %v422_v57 }
  0xd8   : > { %v337_v3 = vsel %vm336_vm5, %v333_v2, %v335_v63  ;;  %v338_v4 = vsel %vm336_vm5, %v335_v63, %v333_v2  ;;  %v455_v14 = vsel %vm451_vm6, %v450_v5, %v427_v60  ;;  %v453_v15 = vsel %vm451_vm6, %v447_v7, %v426_v59  ;;  %v479_v60 = vld [vmem:[#allocation5] sm:$0xf] }
  0xd9   : > { %v430_v8 = vrot.slane %v328_v61, 2  ;;  %v431_v11 = vrot.slane %v329_v62, 2  ;;  %v350_v12 = vmul.f32 %v343_v37, %v337_v3  ;;  %v351_v13 = vmul.f32 %v347_v38, %v338_v4 }
  0xdb   : > { %v357_v17 = vpop.permute.xlu1 %356  ;;  %v355_v18 = vpop.permute.xlu0 %354  ;;  %v461_v19 = vsel %vm456_vm8, %v455_v14, %v431_v11  ;;  %v458_v20 = vsel %vm456_vm8, %v453_v15, %v430_v8  ;;  %v352_v21 = vpack.c.bf16 %v350_v12, %v350_v12  ;;  %v353_v22 = vpack.c.bf16 %v351_v13, %v351_v13 }
  0xdc   : > { %v359_v23 = vsel %vm358_vm7, %v355_v18, %v357_v17  ;;  %v360_v24 = vsel %vm358_vm7, %v357_v17, %v355_v18  ;;  %496 = vmatprep.subr.bf16.mxu0 %v461_v19 }
  0xdd   : > { %v372_v25 = vmul.f32 %v365_v47, %v359_v23  ;;  %v373_v26 = vmul.f32 %v369_v54, %v360_v24  ;;  %497 = vmatpush1.bf16.msra.mxu0 %v458_v20  ;;  %v434_v36 = vrot.slane %v352_v21, 6  ;;  %v435_v37 = vrot.slane %v353_v22, 6 }
  0xdf   : > { %v374_v31 = vpack.c.bf16 %v372_v25, %v372_v25  ;;  %v375_v32 = vpack.c.bf16 %v373_v26, %v373_v26  ;;  %v379_v33 = vpop.permute.xlu1 %378  ;;  %v377_v34 = vpop.permute.xlu0 %376  ;;  %v468_v50 = vsel %vm444_vm4, %v331_v30, %v435_v37  ;;  %v465_v51 = vsel %vm444_vm4, %v330_v35, %v434_v36 }
  0xe0   : > { %v381_v38 = vsel %vm380_vm9, %v377_v34, %v379_v33  ;;  %v382_v39 = vsel %vm380_vm9, %v379_v33, %v377_v34 }
  0xe1   : > { %v394_v40 = vmul.f32 %v387_v27, %v381_v38  ;;  %v395_v41 = vmul.f32 %v391_v28, %v382_v39  ;;  %v438_v43 = vrot.slane %v374_v31, 4  ;;  %v439_v44 = vrot.slane %v375_v32, 4 }
  0xe3   : > { %v396_v45 = vpack.c.bf16 %v394_v40, %v394_v40  ;;  %v397_v46 = vpack.c.bf16 %v395_v41, %v395_v41  ;;  %v401_v47 = vpop.permute.xlu1 %400  ;;  %v399_v0 = vpop.permute.xlu0 %398  ;;  %v472_v54 = vsel %vm451_vm6, %v468_v50, %v439_v44  ;;  %v470_v55 = vsel %vm451_vm6, %v465_v51, %v438_v43 }
  0xe4   : > { %v403_v48 = vsel %vm402_vm10, %v399_v0, %v401_v47  ;;  %v404_v49 = vsel %vm402_vm10, %v401_v47, %v399_v0 }
  0xe5   : > { %v442_v52 = vrot.slane %v396_v45, 2  ;;  %v443_v9 = vrot.slane %v397_v46, 2  ;;  %v416_v53 = vmul.f32 %v409_v1, %v403_v48  ;;  %v417_v10 = vmul.f32 %v413_v42, %v404_v49 }
  0xe7   : > { %v418_v56 = vpack.c.bf16 %v416_v53, %v416_v53  ;;  %v419_v57 = vpack.c.bf16 %v417_v10, %v417_v10  ;;  %v477_v58 = vsel %vm456_vm8, %v472_v54, %v443_v9  ;;  %v474_v59 = vsel %vm456_vm8, %v470_v55, %v442_v52 }
  0xe8   : > { %498 = vmatprep.subr.bf16.mxu0 %v477_v58 }
  0xe9   : > { %499 = vmatpush1.bf16.msra.mxu0 %v474_v59  ;;  %v491_v6 = vsel %vm444_vm4, %v418_v56, 0 }
  0xea   : > { %674 = vmatprep.subr.msk.bf16.mxu0 %vm444_vm4, %v419_v57 }
  0xed   : > { %501 = vmatpush1.bf16.msra.mxu0 %v491_v6 }
  0xf0   : > { %675 = vmatmul.mubr.msk.bf16.vlgmr.msra.gmra.mrb[0].mxu0 %vm486_vm11, %v479_v60 }
  0xf4   : > { %v484_v61 = vpop.permute.xlu0 %483 }
 0x1c3   : > { %v530_v62 = vpop.f32.mrb[0].mxu0 }
 0x1c4   : > { %v531_v63 = vadd.f32 %v530_v62, %v484_v61  ;;  %v532_v2 = vpop.f32.mrb[1].mxu0 }
 0x1c5   : > { %v533_v3 = vadd.f32 %v532_v2, %v484_v61  ;;  %v534_v4 = vpop.f32.mrb[2].mxu0 }
 0x1c6   : > { %v537_v5 = vmin.f32 %v531_v63, 20.0  ;;  %v535_v7 = vpop.f32.mrb[3].mxu0 }
 0x1c7   : > { %v538_v8 = vmin.f32 %v533_v3, 20.0 }
 0x1c8   : > { %v539_v11 = vmul.f32 1.442695, %v537_v5 }
 0x1c9   : > { %v541_v12 = vmul.f32 1.442695, %v538_v8 }
 0x1ca   : > { %751 = vpow2.f32 %v539_v11 }
 0x1cb   : > { %753 = vpow2.f32 %v541_v12 }
 0x1d4   : > { %v752_v13 = vpop.eup %751 }
 0x1d5   : > { %v754_v14 = vpop.eup %753  ;;  %v543_v15 = vadd.f32 2.0, %v752_v13 }
 0x1d6   : > { %v544_v16 = vadd.f32 2.0, %v754_v14 }
 0x1d7   : > { %v545_v17 = vmul.f32 %v752_v13, %v543_v15 }
 0x1d8   : > { %v546_v18 = vmul.f32 %v754_v14, %v544_v16 }
 0x1d9   : > { %v549_v19 = vadd.f32 2.0, %v545_v17  ;;  %v547_v21 = vmul.f32 %v545_v17, %v531_v63 }
 0x1da   : > { %v550_v20 = vadd.f32 2.0, %v546_v18  ;;  %v548_v23 = vmul.f32 %v546_v18, %v533_v3 }
 0x1db   : > { %755 = vrcp.f32 %v549_v19 }
 0x1dc   : > { %757 = vrcp.f32 %v550_v20 }
 0x1e5   : > { %v756_v22 = vpop.eup %755 }
 0x1e6   : > { %v758_v24 = vpop.eup %757  ;;  %v553_v25 = vmul.f32 %v756_v22, %v547_v21 }
 0x1e7   : > { %v554_v26 = vmul.f32 %v758_v24, %v548_v23 }
 0x1e8   : > { %v557_v27 = vrot.slane %v553_v25, 4 }
 0x1e9   : > { %v558_v28 = vrot.slane %v554_v26, 4 }
 0x1ea   : > { %v561_v29 = vadd.f32 %v557_v27, %v553_v25 }
 0x1eb   : > { %v562_v30 = vadd.f32 %v558_v28, %v554_v26 }
 0x1ed   : > { %v565_v31 = vcombine.low %v561_v29, %v562_v30 }
 0x1ef   : > { %567 = vst [vmem:[%s226_s7] sm:$0xff] %v565_v31 }
 0x1f0   : > { %830 = shalt.err (!%p827_p10)
}
 0x1f1   : > { %s831_s29 = scalar_lea.hbm %s1212_s25, 128  ;;  %s835_s14 = scalar_lea.hbm %s1260_s4, 256 }
 0x1f2   : > { %p832_p1 = scmp.ne.s32.totalorder %s1212_s25, %s831_s29  ;;  %p836_p3 = scmp.lt.u32.totalorder %s1212_s25, %s1260_s4 }
 0x1f3   : > { %p837_p11 = scmp.lt.u32.totalorder %s835_s14, %s831_s29  ;;  %p839_p6 = scmp.lt.u32.totalorder %s831_s29, %s1212_s25 }
 0x1f4   : > { %p833_p2 = pnand %p832_p1, %p1018_p8 }
 0x1f5   : > { %p838_p4 = por %p837_p11, %p836_p3 }
 0x1f6   : > { %p834_p7 = pneg %p833_p2 }
 0x1f7   : > { %p840_p9 = por %p839_p6, %p838_p4 }
 0x1f9   : > { %p841_p12 = pnand %p840_p9, %p834_p7 }
 0x1fb   : > { %844 = shalt.err (!%p841_p12)
}
 0x1fc   : > { %689 = dma.vmem_to_hbm [thread:$0]  (%p1018_p8), %s1214_s11, 128, %s1212_s25, %s569_s21  }
 0x1fd PF: > { %s595_s5 = sand.u32 1, %s875_s15   ;;  %p1279_p13 = scmp.ne.s32.totalorder %s1265_s22, 0 }
 0x1fe   : > { %p1280_p0 = scmp.ge.s32.totalorder %s887_s18, 2  ;;  %s596_s6 = scalar_lea.sflag [#allocation4], %s595_s5 }
 0x200   : > { %p700_p5 = pnand %p1280_p0, %p1279_p13 }
 0x202   : > { %870 = dma.done.wait (!%p700_p5), %s596_s6, 128  }
 0x203   : > { %872 = vsyncadd (!%p700_p5), %s596_s6, 4294967168  ;;  %p18_p10 = scmp.ge.s32.totalorder %s974_s26, 4   ;;  %s1281_s15 = smov %s879_s16 }
 0x204   : > { %s1282_s16 = smov %s883_s17  ;;  %s1283_s17 = smov %s1010_s20 }
 0x205   : > { %s1284_s18 = smov %s974_s26  ;;  %20 = sbr.rel (!%p18_p10) target bundleno = 6 (0x6), region = 85 }
 0x20c   :  { %601 = vsyncpa [#allocation3], 1 }
 0x20d   :  { %603 = vsyncpa [#allocation3 + $0x1], 1 }
 0x20e   :  { %604 = vsyncpa [#allocation6], 1 }
 0x20f   :  { %605 = vsyncpa [#allocation4], 1 }
 0x210   :  { %607 = vsyncpa [#allocation4 + $0x1], 1 }

</bundles_post_ra>
